<compile_context>
chip_gen: v6e
topology: v6e:2x2x1
jax: 0.10.0
libtpu: 0.0.40
codegen_flags: <defaults>
</compile_context>

<pallas_src>
import functools

import jax
import jax.numpy as jnp
from jax.experimental import pallas as pl
from jax.experimental.pallas import tpu as pltpu


def _round_up(n, m):
    return ((n + m - 1) // m) * m


def _planner_kernel(x_ref, w1_ref, b1_ref, w2_ref, b2_ref, o_ref):
    # x_ref:  (bt, in_p)      compute dtype (bf16)
    # w1_ref: (in_p, mid_p)   compute dtype
    # b1_ref: (1, mid_p)      f32
    # w2_ref: (mid_p, out_p)  compute dtype
    # b2_ref: (1, out_p)      f32
    # o_ref:  (bt, out_p)     output dtype (f32)
    h = jnp.tanh(
        jnp.dot(x_ref[...], w1_ref[...], preferred_element_type=jnp.float32)
        + b1_ref[...]
    )
    y = jnp.tanh(
        jnp.dot(h.astype(w2_ref.dtype), w2_ref[...],
                preferred_element_type=jnp.float32)
        + b2_ref[...]
    )
    o_ref[...] = y.astype(o_ref.dtype)


def prepare_planner_params(w1, b1, w2, b2, compute_dtype=jnp.bfloat16):
    """One-time layout plumbing (hoisted out of the forward path).

    Args:
      w1: (T, input_size, mid)   b1: (T, mid)
      w2: (T, mid, output_size)  b2: (T, output_size)
    Returns:
      (w1p, b1p, w2p, b2p) padded / recast slabs ready for planner_forward.
    """
    T, input_size, mid = w1.shape
    out_size = w2.shape[2]
    in_p = _round_up(input_size, 128)
    mid_p = _round_up(mid, 128)
    out_p = _round_up(out_size, 128)

    w1p = jnp.pad(w1, ((0, 0), (0, in_p - input_size), (0, mid_p - mid))
                  ).astype(compute_dtype)                       # (T, in_p, mid_p)
    b1p = jnp.pad(b1, ((0, 0), (0, mid_p - mid))
                  )[:, None, :].astype(jnp.float32)             # (T, 1, mid_p)
    w2p = jnp.pad(w2, ((0, 0), (0, mid_p - mid), (0, out_p - out_size))
                  ).astype(compute_dtype)                       # (T, mid_p, out_p)
    b2p = jnp.pad(b2, ((0, 0), (0, out_p - out_size))
                  )[:, None, :].astype(jnp.float32)             # (T, 1, out_p)
    return w1p, b1p, w2p, b2p


def planner_forward(x, w1p, b1p, w2p, b2p, *, output_size, batch_block=256):
    """Runs all topic MLPs.  Returns stacked (T, B, output_size);
    stacked[t] == tanh(tanh(x @ w1[t] + b1[t]) @ w2[t] + b2[t]),
    i.e. the t-th element of the PyTorch Planner's output list."""
    T, in_p, mid_p = w1p.shape
    out_p = w2p.shape[2]
    compute_dtype = w1p.dtype
    B, input_size = x.shape

    # Batch tiling: pad to sublane multiple, block for pipelining / megacore.
    bt = min(_round_up(batch_block, 8), _round_up(B, 8))
    Bp = _round_up(B, bt)
    nb = Bp // bt
    xp = jnp.pad(x, ((0, Bp - B), (0, in_p - input_size))).astype(compute_dtype)

    # VMEM budget: double-buffered blocks + headroom; clamp for v5e/v7x safety.
    cb = jnp.dtype(compute_dtype).itemsize
    ob = jnp.dtype(x.dtype).itemsize
    per_step = (bt * in_p * cb + in_p * mid_p * cb + mid_p * 4
                + mid_p * out_p * cb + out_p * 4 + bt * out_p * ob)
    vmem_limit = int(min(48 << 20, max(16 << 20, 3 * per_step + (4 << 20))))

    out_pad = pl.pallas_call(
        _planner_kernel,
        out_shape=jax.ShapeDtypeStruct((T, Bp, out_p), x.dtype),
        grid_spec=pltpu.PrefetchScalarGridSpec(
            num_scalar_prefetch=0,
            grid=(T, nb),  # topic outer, batch inner -> weights resident across batch blocks
            in_specs=[
                pl.BlockSpec((bt, in_p), lambda t, b: (b, 0)),          # x
                pl.BlockSpec((None, in_p, mid_p), lambda t, b: (t, 0, 0)),   # W1[t]
                pl.BlockSpec((None, 1, mid_p), lambda t, b: (t, 0, 0)),      # b1[t]
                pl.BlockSpec((None, mid_p, out_p), lambda t, b: (t, 0, 0)),  # W2[t]
                pl.BlockSpec((None, 1, out_p), lambda t, b: (t, 0, 0)),      # b2[t]
            ],
            out_specs=pl.BlockSpec((None, bt, out_p), lambda t, b: (t, b, 0)),
        ),
        compiler_params=pltpu.CompilerParams(
            dimension_semantics=("parallel", "parallel"),
            vmem_limit_bytes=vmem_limit,
        ),
    )(xp, w1p, b1p, w2p, b2p)

    # Drop batch / lane padding. Output is already (T, B, out) layout: no transpose.
    return out_pad[:, :B, :output_size]


def init_planner_params(key, num_topics, num_layers, input_size, output_size,
                        mid_size=128, dtype=jnp.float32):
    """Deterministic uniform(-0.08, 0.08) init (like the PyTorch module)."""
    assert num_layers == 2, "This kernel instantiates the 2-layer MLP case."
    k1, k2, k3, k4 = jax.random.split(key, 4)
    scale = 0.08
    w1 = jax.random.uniform(k1, (num_topics, input_size, mid_size),
                            minval=-scale, maxval=scale, dtype=dtype)
    b1 = jax.random.uniform(k2, (num_topics, mid_size),
                            minval=-scale, maxval=scale, dtype=dtype)
    w2 = jax.random.uniform(k3, (num_topics, mid_size, output_size),
                            minval=-scale, maxval=scale, dtype=dtype)
    b2 = jax.random.uniform(k4, (num_topics, output_size),
                            minval=-scale, maxval=scale, dtype=dtype)
    return w1, b1, w2, b2


if __name__ == "__main__":
    # Small shapes consistent with the module's forward.
    num_layers = 2
    num_topics = 3
    input_size = 32
    output_size = 16
    mid_size = 128
    batch = 2

    key = jax.random.PRNGKey(0)
    kx, kp = jax.random.split(key)
    x = jax.random.normal(kx, (batch, input_size), dtype=jnp.float32)
    w1, b1, w2, b2 = init_planner_params(kp, num_topics, num_layers,
                                         input_size, output_size, mid_size)

    # One-time weight formatting (hoisted out of the per-call forward path).
    w1p, b1p, w2p, b2p = prepare_planner_params(w1, b1, w2, b2)

    fwd = jax.jit(planner_forward, static_argnames=("output_size", "batch_block"))
    stacked = fwd(x, w1p, b1p, w2p, b2p, output_size=output_size)
    jax.block_until_ready(stacked)

    assert stacked.shape == (num_topics, batch, output_size)

    # Mirrored bf16-MXU reference (same numerics path as the kernel) + loose f32 check.
    xc = x.astype(jnp.bfloat16)
    for t in range(num_topics):
        h_ref = jnp.tanh(jnp.dot(xc, w1[t].astype(jnp.bfloat16),
                                 preferred_element_type=jnp.float32) + b1[t])
        y_ref = jnp.tanh(jnp.dot(h_ref.astype(jnp.bfloat16), w2[t].astype(jnp.bfloat16),
                                 preferred_element_type=jnp.float32) + b2[t])
        assert jnp.allclose(stacked[t], y_ref, atol=5e-3), \
            f"mismatch vs bf16 reference (topic {t})"
        ref_f32 = jnp.tanh(jnp.tanh(x @ w1[t] + b1[t]) @ w2[t] + b2[t])
        assert jnp.allclose(stacked[t], ref_f32, atol=2e-2), \
            f"mismatch vs f32 reference (topic {t})"

    print("KERNEL_OK")
</pallas_src>

<mosaic_0001>
module attributes {stable_mosaic.version = 11 : i64} {
  func.func @_planner_kernel(%arg0: i32, %arg1: i32, %arg2: memref<8x128xbf16, #tpu.memory_space<vmem>>, %arg3: memref<1x128x128xbf16, #tpu.memory_space<vmem>>, %arg4: memref<1x1x128xf32, #tpu.memory_space<vmem>>, %arg5: memref<1x128x128xbf16, #tpu.memory_space<vmem>>, %arg6: memref<1x1x128xf32, #tpu.memory_space<vmem>>, %arg7: memref<1x8x128xf32, #tpu.memory_space<vmem>>) attributes {dimension_semantics = [#tpu.dimension_semantics<parallel>, #tpu.dimension_semantics<parallel>], iteration_bounds = array<i64: 3, 1>, scalar_prefetch = 0 : i64, scratch_operands = 0 : i64, tpu.core_type = #tpu.core_type<tc>, window_params = [{transform_indices = @transform_0, window_bounds = array<i64: 8, 128>}, {transform_indices = @transform_1, window_bounds = array<i64: 1, 128, 128>}, {transform_indices = @transform_2, window_bounds = array<i64: 1, 1, 128>}, {transform_indices = @transform_3, window_bounds = array<i64: 1, 128, 128>}, {transform_indices = @transform_4, window_bounds = array<i64: 1, 1, 128>}, {transform_indices = @transform_5, window_bounds = array<i64: 1, 8, 128>}]} {
    %c0 = arith.constant 0 : index
    %c0_0 = arith.constant 0 : index
    %0 = vector.load %arg2[%c0, %c0_0] : memref<8x128xbf16, #tpu.memory_space<vmem>>, vector<8x128xbf16>
    %c0_1 = arith.constant 0 : index
    %c0_2 = arith.constant 0 : index
    %c0_3 = arith.constant 0 : index
    %1 = vector.load %arg3[%c0_1, %c0_2, %c0_3] : memref<1x128x128xbf16, #tpu.memory_space<vmem>>, vector<1x128x128xbf16>
    %2 = vector.shape_cast %1 : vector<1x128x128xbf16> to vector<128x128xbf16>
    %cst = arith.constant dense<0.000000e+00> : vector<8x128xf32>
    %3 = tpu.matmul %0, %2, %cst {dimension_numbers = #tpu.dot_dimension_numbers<[1], [0], [0], [1], [0, 0, 1, 1], [], []>} : vector<8x128xbf16>, vector<128x128xbf16>, vector<8x128xf32> -> vector<8x128xf32>
    %c0_4 = arith.constant 0 : index
    %c0_5 = arith.constant 0 : index
    %c0_6 = arith.constant 0 : index
    %4 = vector.load %arg4[%c0_4, %c0_5, %c0_6] : memref<1x1x128xf32, #tpu.memory_space<vmem>>, vector<1x1x128xf32>
    %5 = vector.shape_cast %4 : vector<1x1x128xf32> to vector<1x128xf32>
    %6 = vector.broadcast %5 : vector<1x128xf32> to vector<8x128xf32>
    %7 = arith.addf %3, %6 : vector<8x128xf32>
    %8 = math.tanh %7 : vector<8x128xf32>
    %9 = arith.truncf %8 : vector<8x128xf32> to vector<8x128xbf16>
    %c0_7 = arith.constant 0 : index
    %c0_8 = arith.constant 0 : index
    %c0_9 = arith.constant 0 : index
    %10 = vector.load %arg5[%c0_7, %c0_8, %c0_9] : memref<1x128x128xbf16, #tpu.memory_space<vmem>>, vector<1x128x128xbf16>
    %11 = vector.shape_cast %10 : vector<1x128x128xbf16> to vector<128x128xbf16>
    %cst_10 = arith.constant dense<0.000000e+00> : vector<8x128xf32>
    %12 = tpu.matmul %9, %11, %cst_10 {dimension_numbers = #tpu.dot_dimension_numbers<[1], [0], [0], [1], [0, 0, 1, 1], [], []>} : vector<8x128xbf16>, vector<128x128xbf16>, vector<8x128xf32> -> vector<8x128xf32>
    %c0_11 = arith.constant 0 : index
    %c0_12 = arith.constant 0 : index
    %c0_13 = arith.constant 0 : index
    %13 = vector.load %arg6[%c0_11, %c0_12, %c0_13] : memref<1x1x128xf32, #tpu.memory_space<vmem>>, vector<1x1x128xf32>
    %14 = vector.shape_cast %13 : vector<1x1x128xf32> to vector<1x128xf32>
    %15 = vector.broadcast %14 : vector<1x128xf32> to vector<8x128xf32>
    %16 = arith.addf %12, %15 : vector<8x128xf32>
    %17 = math.tanh %16 : vector<8x128xf32>
    %c0_14 = arith.constant 0 : index
    %c0_15 = arith.constant 0 : index
    %c0_16 = arith.constant 0 : index
    %18 = vector.load %arg7[%c0_14, %c0_15, %c0_16] : memref<1x8x128xf32, #tpu.memory_space<vmem>>, vector<1x8x128xf32>
    %19 = vector.shape_cast %18 : vector<1x8x128xf32> to vector<8x128xf32>
    %20 = vector.shape_cast %17 : vector<8x128xf32> to vector<1x8x128xf32>
    tpu.vector_store %arg7[%c0_14, %c0_15, %c0_16], %20 {strides = array<i32>} : memref<1x8x128xf32, #tpu.memory_space<vmem>>, vector<1x8x128xf32>,
    return
  }
  func.func @transform_0(%arg0: i32, %arg1: i32) -> (i32, i32) {
    %c0_i32 = arith.constant 0 : i32
    %c0_i32_0 = arith.constant 0 : i32
    return %arg1, %c0_i32 : i32, i32
  }
  func.func @transform_1(%arg0: i32, %arg1: i32) -> (i32, i32, i32) {
    %c0_i32 = arith.constant 0 : i32
    %c0_i32_0 = arith.constant 0 : i32
    %c0_i32_1 = arith.constant 0 : i32
    return %arg0, %c0_i32, %c0_i32_0 : i32, i32, i32
  }
  func.func @transform_2(%arg0: i32, %arg1: i32) -> (i32, i32, i32) {
    %c0_i32 = arith.constant 0 : i32
    %c0_i32_0 = arith.constant 0 : i32
    %c0_i32_1 = arith.constant 0 : i32
    return %arg0, %c0_i32, %c0_i32_0 : i32, i32, i32
  }
  func.func @transform_3(%arg0: i32, %arg1: i32) -> (i32, i32, i32) {
    %c0_i32 = arith.constant 0 : i32
    %c0_i32_0 = arith.constant 0 : i32
    %c0_i32_1 = arith.constant 0 : i32
    return %arg0, %c0_i32, %c0_i32_0 : i32, i32, i32
  }
  func.func @transform_4(%arg0: i32, %arg1: i32) -> (i32, i32, i32) {
    %c0_i32 = arith.constant 0 : i32
    %c0_i32_0 = arith.constant 0 : i32
    %c0_i32_1 = arith.constant 0 : i32
    return %arg0, %c0_i32, %c0_i32_0 : i32, i32, i32
  }
  func.func @transform_5(%arg0: i32, %arg1: i32) -> (i32, i32, i32) {
    %c0_i32 = arith.constant 0 : i32
    %c0_i32_0 = arith.constant 0 : i32
    return %arg0, %arg1, %c0_i32 : i32, i32, i32
  }
}

</mosaic_0001>

<bundles_post_ra>
// kernel: planner_forward.1
= control target key start
LH: loop header
LB: loop body
LE: loop exit
PB: predicated region body
PF: predicated region fallthrough
CT: control target
= control target key end

     0   :  { %10 = vsyncpa [#allocation3], 0  ;;  %s1197_s0 = inlined_call_operand.vmem [shape: bf16[8,128], index: 0, kind: input, shape index: {}]   ;;  %s1198_s1 = inlined_call_operand.hbm [shape: bf16[3,128,128], index: 1, kind: input, shape index: {}]   ;;  %s1199_s2 = inlined_call_operand.vmem [shape: f32[3,1,128], index: 2, kind: input, shape index: {}]   ;;  %s1200_s3 = inlined_call_operand.hbm [shape: bf16[3,128,128], index: 3, kind: input, shape index: {}]   ;;  %s1201_s4 = inlined_call_operand.vmem [shape: f32[3,1,128], index: 4, kind: input, shape index: {}]   ;;  %s1202_s5 = inlined_call_operand.vmem [shape: f32[3,8,128], index: 5, kind: output, shape index: {}]  }
   0x1   :  { %12 = vsyncpa [#allocation3 + $0x1], 0 }
   0x2   :  { %13 = vsyncpa [#allocation5], 0 }
   0x3   :  { %15 = vsyncpa [#allocation5 + $0x1], 0  ;;  %s1042_s18 = smov 0   ;;  %s1044_s19 = smov 0  }
   0x4   :  { %s1046_s20 = smov 0   ;;  %s1048_s21 = smov 0  }
   0x5   :  { %s1050_s22 = smov 0   ;;  %s1052_s23 = smov 0  }
   0x6 LB: > { %s715_s24 = sadd.s32 4294967295, %s1004_s23   ;;  %s33_s25 = sadd.s32 1, %s1000_s22  ;;  %s1004_s23 = sphi %s1052_s23, %s21_s23   ;;  %s1000_s22 = sphi %s1050_s22, %s1211_s22   ;;  %s996_s21 = sphi %s1048_s21, %s1210_s21   ;;  %s992_s20 = sphi %s1046_s20, %s1209_s20   ;;  %s988_s19 = sphi %s1044_s19, %s1208_s19   ;;  %s984_s18 = sphi %s1042_s18, %s1207_s18  }
   0x7   : > { %p35_p0 = scmp.ge.s32.totalorder %s33_s25, 3  ;;  %s66_s26 = sadd.s32 1, %s992_s20 }
   0x8   : > { %p73_p1 = scmp.ne.s32.totalorder %s992_s20, %s988_s19  ;;  %p74_p2 = scmp.eq.s32.totalorder %s1004_s23, 0 }
   0x9   : > { %s1213_s25 = smov (%p35_p0, %s33_s25), 0  ;;  %p79_p4 = scmp.ne.s32.totalorder %s988_s19, %s984_s18 }
   0xa   : > { %p1078_p3 = por %p74_p2, %p73_p1  ;;  %s63_s28 = ssub.s32 %s1000_s22, %s1213_s25 }
   0xb   : > { %p80_p5 = scmp.eq.s32.totalorder %s715_s24, 0  ;;  %p64_p6 = scmp.eq.s32.totalorder %s63_s28, 0 }
   0xc   : > { %p821_p8 = scmp.lt.s32.totalorder %s1004_s23, 3  ;;  %s1094_s6 = sand.u32 1, %s992_s20  }
   0xd   : > { %p1085_p7 = por %p80_p5, %p79_p4  ;;  %s750_s7 = sshll.u32 %s1000_s22, 10 }
   0xe   : > { %s1091_s30 = scalar_select %p64_p6, %s992_s20, %s66_s26  }
   0xf   : > { %s720_s8 = sshll.u32 %s1094_s6, 6  ;;  %s226_s11 = scalar_lea.hbm %s1198_s1, %s750_s7 }
  0x10   : > { %s220_s12 = scalar_lea.vmem [#allocation2], %s720_s8  ;;  %p1105_p9 = pnand %p821_p8, %p1078_p3 }
  0x11   : > { %s227_s13 = sshll.u32 %s220_s12, 4  ;;  %s217_s15 = scalar_lea.sflag [#allocation3], %s1094_s6  ;;  %s228_s13 = int_to_ptr.vmem [resolvable:$true] %s227_s13 }
  0x12   : > { %p896_p10 = pneg %p1105_p9  ;;  %s907_s16 = scalar_lea.vmem %s228_s13, 1024 }
  0x13   : > { %p908_p11 = scmp.ne.s32.totalorder %s228_s13, %s907_s16  ;;  %s1006_s17 = smov [#allocation2]  }
  0x14   : > { %s912_s18 = sshll.u32 %s1006_s17, 4  ;;  %s913_s18 = int_to_ptr.vmem [resolvable:$false] %s912_s18 }
  0x15   : > { %p910_p12 = pnand %p908_p11, %p896_p10  ;;  %s914_s24 = scalar_lea.vmem %s913_s18, 2048 }
  0x16   : > { %p915_p0 = scmp.lt.s32.totalorder %s228_s13, %s913_s18  ;;  %p916_p1 = scmp.lt.s32.totalorder %s914_s24, %s907_s16 }
  0x17   : > { %p911_p13 = pneg %p910_p12 }
  0x18   : > { %p917_p2 = por %p916_p1, %p915_p0 }
  0x1a   : > { %p918_p3 = pnand %p917_p2, %p911_p13 }
  0x1c   : > { %921 = shalt.err (!%p918_p3)
}
  0x1d   : > { %s1007_s26 = smov 64   ;;  %s1008_s27 = smov 4  }
  0x1e   : > { %817 = dma.hbm_to_vmem [thread:$0]  (!%p1105_p9), %s226_s11, 1024, %s228_s13, %s217_s15, %s1007_s26, %s1007_s26, %s1008_s27  }
  0x1f   : > { %p726_p4 = scmp.ge.s32.totalorder %s1004_s23, 1  ;;  %p268_p5 = scmp.lt.s32.totalorder %s1004_s23, 4 }
  0x20   : > { %s253_s12 = scalar_lea.hbm %s1200_s3, %s750_s7  ;;  %s247_s16 = scalar_lea.vmem [#allocation4], %s720_s8 }
  0x21   : > { %p1119_p6 = pnand %p726_p4, %p268_p5  ;;  %s254_s17 = sshll.u32 %s247_s16, 4  ;;  %s255_s17 = int_to_ptr.vmem [resolvable:$true] %s254_s17 }
  0x22   : > { %s244_s18 = scalar_lea.sflag [#allocation5], %s1094_s6  ;;  %s935_s24 = scalar_lea.vmem %s255_s17, 1024 }
  0x23   : > { %p936_p8 = scmp.ne.s32.totalorder %s255_s17, %s935_s24  ;;  %s1009_s11 = smov [#allocation4]  }
  0x24   : > { %s940_s13 = sshll.u32 %s1009_s11, 4  ;;  %s941_s13 = int_to_ptr.vmem [resolvable:$false] %s940_s13 }
  0x25   : > { %p938_p11 = pnand %p936_p8, %p896_p10  ;;  %s942_s15 = scalar_lea.vmem %s941_s13, 2048 }
  0x26   : > { %p943_p13 = scmp.lt.s32.totalorder %s255_s17, %s941_s13  ;;  %p944_p0 = scmp.lt.s32.totalorder %s942_s15, %s935_s24 }
  0x27   : > { %p939_p12 = pneg %p938_p11 }
  0x28   : > { %p945_p1 = por %p944_p0, %p943_p13 }
  0x2a   : > { %p946_p2 = pnand %p945_p1, %p939_p12 }
  0x2c   : > { %949 = shalt.err (!%p946_p2)
}
  0x2d   : > { %820 = dma.hbm_to_vmem [thread:$0]  (!%p1105_p9), %s253_s12, 1024, %s255_s17, %s244_s18, %s1007_s26, %s1007_s26, %s1008_s27  }
  0x2e   : > { %272 = sbr.rel (%p1119_p6) target bundleno = 509 (0x1fd), region = 40  ;;  %s274_s6 = sand.u32 (!%p1119_p6), 1, %s988_s19  }
  0x2f   : > { %s727_s7 = sshll.u32 (!%p1119_p6), %s274_s6, 6  ;;  %s275_s8 = scalar_lea.sflag (!%p1119_p6), [#allocation3], %s274_s6 }
  0x30   : > { %s1137_s9 = scalar_lea.vmem (!%p1119_p6), [#allocation2], %s727_s7 }
  0x33   : > { %975 = dma.done.wait (%p1085_p7), %s275_s8, 1024  }
  0x34   : > { %977 = vsyncadd (%p1085_p7), %s275_s8, 4294966272  ;;  %s284_s10 = scalar_lea.sflag [#allocation5], %s274_s6  ;;  %s1143_s16 = scalar_lea.vmem [#allocation4], %s727_s7 }
  0x35   : > { %979 = dma.done.wait (%p1085_p7), %s284_s10, 1024  }
  0x36   : > { %981 = vsyncadd (%p1085_p7), %s284_s10, 4294966272  ;;  %v1010_v0 = vmov 0.0   ;;  %vm1011_vm0 = vmmov 0   ;;  %v874_v1 = vld [vmem:[%s1137_s9 + $0x38] sm:$0xff]   ;;  %v875_v2 = vld [vmem:[%s1137_s9 + $0x30] sm:$0xff]   ;;  %p335_p7 = scmp.lt.s32.totalorder %s996_s21, 2 }
  0x37   : > { %770 = vmatprep.subr.bf16.mxu0 %v1010_v0  ;;  %786 = vmatprep.mubr.msk.bf16.mxu0 %vm1011_vm0, %v1010_v0  ;;  %v876_v3 = vld [vmem:[%s1137_s9 + $0x28] sm:$0xff]   ;;  %v882_v4 = vld [vmem:[%s1143_s16 + $0x38] sm:$0xff]   ;;  %v877_v5 = vld [vmem:[%s1137_s9 + $0x20] sm:$0xff]  }
  0x38   : > { %790 = vmatprep.subr.bf16.mxu1 %v1010_v0  ;;  %806 = vmatprep.mubr.msk.bf16.mxu1 %vm1011_vm0, %v1010_v0  ;;  %v883_v6 = vld [vmem:[%s1143_s16 + $0x30] sm:$0xff]   ;;  %v878_v7 = vld [vmem:[%s1137_s9 + $0x18] sm:$0xff]   ;;  %v884_v8 = vld [vmem:[%s1143_s16 + $0x28] sm:$0xff]   ;;  %s1215_s21 = smov (!%p335_p7, %s996_s21), 2 }
  0x39   : > { %771 = vmatpush3.bf16.msra.mxu0 %v874_v1  ;;  %791 = vmatpush3.bf16.msra.mxu1 %v882_v4  ;;  %v879_v9 = vld [vmem:[%s1137_s9 + $0x10] sm:$0xff]   ;;  %v880_v10 = vld [vmem:[%s1137_s9 + $0x8] sm:$0xff]   ;;  %v881_v11 = vld [vmem:[%s1137_s9] sm:$0xff]   ;;  %s337_s28 = scalar_lea.vmem %s1199_s2, %s1215_s21  ;;  %s340_s18 = scalar_lea.vmem %s1201_s4, %s1215_s21 }
  0x3a   : > { %772 = vmatprep.subr.bf16.mxu0 %v1010_v0  ;;  %792 = vmatprep.subr.bf16.mxu1 %v1010_v0  ;;  %v349_v12 = vld [vmem:[%s1197_s0] sm:$0xf]  ;;  %v886_v14 = vld [vmem:[%s1143_s16 + $0x18] sm:$0xff]   ;;  %v887_v15 = vld [vmem:[%s1143_s16 + $0x10] sm:$0xff]   ;;  %s729_s24 = sshll.u32 %s1215_s21, 3 }
  0x3b   : > { %v885_v13 = vld [vmem:[%s1143_s16 + $0x20] sm:$0xff]   ;;  %v888_v16 = vld [vmem:[%s1143_s16 + $0x8] sm:$0xff]   ;;  %s347_s15 = scalar_lea.vmem %s1202_s5, %s729_s24 }
  0x3c   : > { %v889_v17 = vld [vmem:[%s1143_s16] sm:$0xff]  }
  0x3d   : > { %773 = vmatpush3.bf16.msra.mxu0 %v875_v2  ;;  %793 = vmatpush3.bf16.msra.mxu1 %v883_v6  ;;  %v730_v18 = vld [vmem:[%s337_s28] ss:$0 sm:$0xff] }
  0x3e   : > { %774 = vmatprep.subr.bf16.mxu0 %v1010_v0  ;;  %794 = vmatprep.subr.bf16.mxu1 %v1010_v0  ;;  %v739_v26 = vld [vmem:[%s340_s18] ss:$0 sm:$0xff] }
  0x41   : > { %775 = vmatpush3.bf16.msra.mxu0 %v876_v3  ;;  %795 = vmatpush3.bf16.msra.mxu1 %v884_v8 }
  0x42   : > { %776 = vmatprep.subr.bf16.mxu0 %v1010_v0  ;;  %796 = vmatprep.subr.bf16.mxu1 %v1010_v0 }
  0x45   : > { %777 = vmatpush3.bf16.msra.mxu0 %v877_v5  ;;  %797 = vmatpush3.bf16.msra.mxu1 %v885_v13 }
  0x46   : > { %778 = vmatprep.subr.bf16.mxu0 %v1010_v0  ;;  %798 = vmatprep.subr.bf16.mxu1 %v1010_v0 }
  0x49   : > { %779 = vmatpush3.bf16.msra.mxu0 %v878_v7  ;;  %799 = vmatpush3.bf16.msra.mxu1 %v886_v14 }
  0x4a   : > { %780 = vmatprep.subr.bf16.mxu0 %v1010_v0  ;;  %800 = vmatprep.subr.bf16.mxu1 %v1010_v0 }
  0x4d   : > { %781 = vmatpush3.bf16.msra.mxu0 %v879_v9  ;;  %801 = vmatpush3.bf16.msra.mxu1 %v887_v15 }
  0x4e   : > { %782 = vmatprep.subr.bf16.mxu0 %v1010_v0  ;;  %802 = vmatprep.subr.bf16.mxu1 %v1010_v0 }
  0x51   : > { %783 = vmatpush3.bf16.msra.mxu0 %v880_v10  ;;  %803 = vmatpush3.bf16.msra.mxu1 %v888_v16 }
  0x52   : > { %784 = vmatprep.subr.bf16.mxu0 %v1010_v0  ;;  %804 = vmatprep.subr.bf16.mxu1 %v1010_v0 }
  0x55   : > { %785 = vmatpush3.bf16.msra.mxu0 %v881_v11  ;;  %805 = vmatpush3.bf16.msra.mxu1 %v889_v17 }
  0x58   : > { %787 = vmatmul.mubr.bf16.vlgmr.msra.gmra.mxu0 %v349_v12 }
 0x118   : > { %v455_v19 = vpop.f32.mrf.mxu0 }
 0x119   : > { %v456_v20 = vadd.f32 %v730_v18, %v455_v19 }
 0x11a   : > { %v788_v21 = vpop.f32.mrf.mxu0 }
 0x11b   : > { %890 = vtanh.f32 %v456_v20 }
 0x11c   : > { %v458_v22 = vpop.f32.mrf.mxu0 }
 0x11e   : > { %v789_v23 = vpop.f32.mrf.mxu0 }
 0x128   : > { %v891_v24 = vpop.eup %890 }
 0x129   : > { %v462_v25 = vpack.c.bf16 %v891_v24, %v891_v24 }
 0x12b   : > { %807 = vmatmul.mubr.bf16.vlgmr.msra.gmra.mxu1 %v462_v25 }
 0x1eb   : > { %v568_v27 = vpop.f32.mrf.mxu1 }
 0x1ec   : > { %v569_v28 = vadd.f32 %v739_v26, %v568_v27 }
 0x1ed   : > { %v808_v29 = vpop.f32.mrf.mxu1 }
 0x1ee   : > { %892 = vtanh.f32 %v569_v28 }
 0x1ef   : > { %v571_v30 = vpop.f32.mrf.mxu1 }
 0x1f1   : > { %v809_v31 = vpop.f32.mrf.mxu1 }
 0x1fb   : > { %v893_v32 = vpop.eup %892 }
 0x1fc   : > { %575 = vst [vmem:[%s347_s15] sm:$0xff] %v893_v32 }
 0x1fd PF: > { %s21_s23 = sadd.s32 1, %s1004_s23   ;;  %s1207_s18 = smov %s988_s19 }
 0x1fe   : > { %p18_p9 = scmp.ge.s32.totalorder %s21_s23, 5   ;;  %s1208_s19 = smov %s992_s20 }
 0x1ff   : > { %s1209_s20 = smov %s1091_s30  ;;  %s1210_s21 = smov %s1000_s22 }
 0x200   : > { %s1211_s22 = smov %s1213_s25  ;;  %20 = sbr.rel (!%p18_p9) target bundleno = 6 (0x6), region = 102 }
 0x205   :  { %601 = vsyncpa [#allocation3], 1 }
 0x206   :  { %603 = vsyncpa [#allocation3 + $0x1], 1 }
 0x207   :  { %604 = vsyncpa [#allocation5], 1 }
 0x208   :  { %606 = vsyncpa [#allocation5 + $0x1], 1 }

</bundles_post_ra>
